<compile_context>
chip_gen: v7x
topology: tpu7x:2x2x1
jax: 0.10.0
libtpu: 0.0.40
codegen_flags: <defaults>
</compile_context>

<pallas_src>
import functools

import jax
import jax.numpy as jnp
from jax.experimental import pallas as pl
from jax.experimental.pallas import tpu as pltpu


# ----------------------------------------------------------------------------
# Generation-aware configuration.
# ----------------------------------------------------------------------------
def _tpu_config():
    """Returns (vmem_limit_bytes, prefer_split_for_megacore)."""
    vmem_cap = None
    try:
        info = pltpu.get_tpu_info()
        for name in ("vmem_capacity_bytes", "vmem_bytes", "vmem_capacity"):
            v = getattr(info, name, None)
            if v:
                vmem_cap = int(v)
                break
    except Exception:
        vmem_cap = None
    if vmem_cap is None:
        vmem_cap = 64 * 1024 * 1024          # conservative (v7x-sized) default
    # <100 MiB per-core VMEM => v7x-like part with 2 TensorCores sharing HBM:
    # prefer the split path so the row axes can be "parallel" (megacore).
    two_tc = vmem_cap < 100 * 1024 * 1024
    vmem_limit = min(int(vmem_cap * 0.75), 96 * 1024 * 1024)
    vmem_limit = max(vmem_limit, 32 * 1024 * 1024)
    return vmem_limit, two_tc


_VMEM_LIMIT_BYTES, _TWO_TC = _tpu_config()


def _round_up(x, m):
    return (x + m - 1) // m * m


def _choose_tile(dim, target):
    """(tile, padded_dim): tile is a 128-multiple <= target; tile | padded_dim.

    Pads the dim up to a multiple of the tile (cdiv-style) rather than
    shrinking the tile, so awkward sizes (e.g. 128 * prime) keep large tiles.
    """
    target = max(128, _round_up(int(target), 128))
    dp = _round_up(max(int(dim), 1), 128)
    t = min(target, dp)
    return t, _round_up(dp, t)


def _pad2d(a, rows, cols):
    r, c = a.shape
    if r == rows and c == cols:
        return a
    return jnp.pad(a, ((0, rows - r), (0, cols - c)))


# ----------------------------------------------------------------------------
# Generic tiled matmul kernels (split path + featureless path).
# ----------------------------------------------------------------------------
def _matmul_kernel_f32out(a_ref, b_ref, o_ref, *, apply_relu):
    """f32 output: accumulate directly into the resident output block."""
    k = pl.program_id(2)

    @pl.when(k == 0)
    def _():
        o_ref[...] = jnp.zeros_like(o_ref)

    o_ref[...] += jnp.dot(a_ref[...], b_ref[...],
                          preferred_element_type=jnp.float32)

    if apply_relu:
        @pl.when(k == pl.num_programs(2) - 1)
        def _():
            o_ref[...] = jnp.maximum(o_ref[...], 0.0)


def _matmul_kernel_acc(a_ref, b_ref, o_ref, acc_ref, *, apply_relu):
    """Narrow output dtype: keep a separate f32 accumulator for precision."""
    k = pl.program_id(2)

    @pl.when(k == 0)
    def _():
        acc_ref[...] = jnp.zeros_like(acc_ref)

    acc_ref[...] += jnp.dot(a_ref[...], b_ref[...],
                            preferred_element_type=jnp.float32)

    @pl.when(k == pl.num_programs(2) - 1)
    def _():
        out = acc_ref[...]
        if apply_relu:
            out = jnp.maximum(out, 0.0)
        o_ref[...] = out.astype(o_ref.dtype)


def _matmul_padded(a_p, b_p, *, apply_relu=False, out_dtype=jnp.float32,
                   tm_target=1024, tn_target=512, tk_target=1024,
                   full_k_threshold=2048):
    """relu?(a_p @ b_p) for 128-aligned bf16 operands.

    Returns an array of shape (a_p.shape[0], b_p.shape[1]); any extra padding
    needed to reach tile multiples is added (and stripped) internally — a
    no-op when the caller passes tile-aligned arrays (e.g. the stored A).
    """
    M, K = a_p.shape
    K2, N = b_p.shape
    assert K == K2, (a_p.shape, b_p.shape)

    tm, Mp = _choose_tile(M, tm_target)
    tn, Np = _choose_tile(N, tn_target)
    Kp128 = _round_up(K, 128)
    if Kp128 <= full_k_threshold:
        tk, Kp = Kp128, Kp128          # single K step: B DMA'd once per (i, j)
    else:
        tk, Kp = _choose_tile(K, tk_target)

    a_p = _pad2d(a_p, Mp, Kp)
    b_p = _pad2d(b_p, Kp, Np)

    grid = (Mp // tm, Np // tn, Kp // tk)
    out_is_f32 = jnp.dtype(out_dtype) == jnp.dtype(jnp.float32)

    if out_is_f32:
        kernel = functools.partial(_matmul_kernel_f32out, apply_relu=apply_relu)
        scratch = []
    else:
        kernel = functools.partial(_matmul_kernel_acc, apply_relu=apply_relu)
        scratch = [pltpu.VMEM((tm, tn), jnp.float32)]

    out = pl.pallas_call(
        kernel,
        out_shape=jax.ShapeDtypeStruct((Mp, Np), out_dtype),
        grid_spec=pltpu.PrefetchScalarGridSpec(
            num_scalar_prefetch=0,
            grid=grid,
            in_specs=[
                pl.BlockSpec((tm, tk), lambda i, j, k: (i, k)),
                pl.BlockSpec((tk, tn), lambda i, j, k: (k, j)),
            ],
            out_specs=pl.BlockSpec((tm, tn), lambda i, j, k: (i, j)),
            scratch_shapes=scratch,
        ),
        compiler_params=pltpu.CompilerParams(
            dimension_semantics=("parallel", "parallel", "arbitrary"),
            vmem_limit_bytes=_VMEM_LIMIT_BYTES,
        ),
        cost_estimate=pl.CostEstimate(
            flops=2 * Mp * Np * Kp,
            transcendentals=0,
            bytes_accessed=(Mp * Kp * 2 * (Np // tn)       # A re-fetched per j
                            + Kp * Np * 2 * (Mp // tm)     # B re-fetched per i
                            + Mp * Np * jnp.dtype(out_dtype).itemsize),
        ),
    )(a_p, b_p)
    return out[:M, :N]


def pallas_matmul(a, b, *, apply_relu=False, out_dtype=jnp.float32, **tile_kw):
    """Convenience wrapper for unpadded (f32) operands."""
    M, K = a.shape
    _, N = b.shape
    a_p = _pad2d(a, _round_up(M, 128), _round_up(K, 128)).astype(jnp.bfloat16)
    b_p = _pad2d(b, _round_up(K, 128), _round_up(N, 128)).astype(jnp.bfloat16)
    out = _matmul_padded(a_p, b_p, apply_relu=apply_relu, out_dtype=out_dtype,
                         **tile_kw)
    return out[:M, :N]


# ----------------------------------------------------------------------------
# Fused GCN kernel: out = relu?(A @ (x @ Theta)) with pre_sup kept in VMEM.
# ----------------------------------------------------------------------------
def _fused_gcn_kernel(a_ref, x_ref, th_ref, o_ref, ps_ref, *, apply_relu):
    i = pl.program_id(0)   # row-block of A / output
    k = pl.program_id(1)   # column-block of A / row-block of pre_sup

    # The i==0 pass computes every pre_sup block once and keeps it resident in
    # a VMEM scratch (bf16) for all later row blocks.  Correct only because
    # the grid runs sequentially on ONE core (both axes "arbitrary"); 2-TC
    # parts use the split (megacore) path instead of flipping this flag.
    @pl.when(i == 0)
    def _():
        ps = jnp.dot(x_ref[...], th_ref[...],
                     preferred_element_type=jnp.float32)
        ps_ref[k] = ps.astype(ps_ref.dtype)

    @pl.when(k == 0)
    def _():
        o_ref[...] = jnp.zeros_like(o_ref)

    o_ref[...] += jnp.dot(a_ref[...], ps_ref[k],
                          preferred_element_type=jnp.float32)

    if apply_relu:
        @pl.when(k == pl.num_programs(1) - 1)
        def _():
            o_ref[...] = jnp.maximum(o_ref[...], 0.0)


def gcn_forward_padded(A_p, x_p, th_p, *, t_node, apply_relu=False):
    """relu?(A_p @ (x_p @ th_p)) on 128-aligned bf16 operands (padded result)."""
    Np = A_p.shape[0]
    in_p = x_p.shape[1]
    out_p = th_p.shape[1]
    assert A_p.shape == (Np, Np) and x_p.shape[0] == Np and th_p.shape[0] == in_p
    assert Np % t_node == 0
    n_k = Np // t_node

    # Fused-path VMEM estimate: double-buffered A/x/Theta/out tiles + resident
    # pre_sup scratch.
    ps_bytes = Np * out_p * 2
    vmem_est = (2 * t_node * t_node * 2        # A tiles (bf16)
                + 2 * t_node * in_p * 2        # x tiles (bf16)
                + 2 * in_p * out_p * 2         # Theta (bf16)
                + 2 * t_node * out_p * 4       # output tiles (f32)
                + ps_bytes)                    # pre_sup scratch (bf16)
    fused_ok = ((not _TWO_TC or n_k == 1)      # keep megacore usable on 2-TC parts
                and ps_bytes <= min(32 * 1024 * 1024, _VMEM_LIMIT_BYTES // 3)
                and vmem_est <= int(0.8 * _VMEM_LIMIT_BYTES))

    if not fused_ok:
        # Split path: two tiled matmuls whose row axes are "parallel", so both
        # TensorCores on v7x stream disjoint row blocks of A.  pre_sup
        # round-trips HBM in bf16 (half the f32 traffic).
        pre_sup = _matmul_padded(x_p, th_p, out_dtype=jnp.bfloat16,
                                 tm_target=t_node)
        return _matmul_padded(A_p, pre_sup, apply_relu=apply_relu,
                              out_dtype=jnp.float32,
                              tm_target=t_node, tk_target=t_node)

    kernel = functools.partial(_fused_gcn_kernel, apply_relu=apply_relu)
    flops = 2 * Np * in_p * out_p + 2 * Np * Np * out_p
    bytes_accessed = (A_p.size + x_p.size + th_p.size) * 2 + Np * out_p * 4

    return pl.pallas_call(
        kernel,
        out_shape=jax.ShapeDtypeStruct((Np, out_p), jnp.float32),
        grid_spec=pltpu.PrefetchScalarGridSpec(
            num_scalar_prefetch=0,
            grid=(n_k, n_k),
            in_specs=[
                pl.BlockSpec((t_node, t_node), lambda i, k: (i, k)),   # A tile
                # x row-block: only consumed on the i==0 pass; constant block
                # index for i>0 lets Pallas elide the redundant DMAs.
                pl.BlockSpec((t_node, in_p),
                             lambda i, k: (jnp.where(i == 0, k, 0), 0)),
                pl.BlockSpec((in_p, out_p), lambda i, k: (0, 0)),      # Theta
            ],
            out_specs=pl.BlockSpec((t_node, out_p), lambda i, k: (i, 0)),
            scratch_shapes=[pltpu.VMEM((n_k, t_node, out_p), jnp.bfloat16)],
        ),
        compiler_params=pltpu.CompilerParams(
            # i must stay "arbitrary": the pre_sup scratch is filled on the
            # i==0 pass and consumed by every later i on the same core.
            dimension_semantics=("arbitrary", "arbitrary"),
            vmem_limit_bytes=_VMEM_LIMIT_BYTES,
        ),
        cost_estimate=pl.CostEstimate(
            flops=flops, transcendentals=0, bytes_accessed=bytes_accessed),
    )(A_p, x_p, th_p)


# ----------------------------------------------------------------------------
# Module port.
# ----------------------------------------------------------------------------
class GraphConvolution:
    """JAX/Pallas port of the PyTorch GraphConvolution module.

    Note: computation uses bf16 operands with f32 accumulation (~1e-2 relative
    deviation from an all-f32 reference).
    """

    def __init__(self, input_dim, output_dim, A_tilde, activation=None,
                 featureless=False, dropout_rate=0.0, *, key,
                 node_tile_target=1024):
        A = jnp.asarray(A_tilde, jnp.float32)
        n = A.shape[0]
        self.n_nodes = n
        self.input_dim = int(input_dim)
        self.output_dim = int(output_dim)
        self.featureless = featureless
        self.activation = activation        # None, "relu", or a callable
        # TODO(synk): nn.Dropout is constructed in the reference but never
        # applied in forward, so it is intentionally not implemented here.
        self.dropout_rate = dropout_rate
        self.embedding = None

        # Parameter (f32 master copy), as in torch.randn(input_dim, output_dim).
        self.Theta = jax.random.normal(key, (input_dim, output_dim), jnp.float32)

        # Kernel-ready operands: padded to 128-aligned tiles and cast to bf16
        # ONCE here (not per call) — A is the dominant HBM traffic.
        self._t_node, self._Np = _choose_tile(n, node_tile_target)
        self._in_p = _round_up(self.input_dim, 128)
        self._out_p = _round_up(self.output_dim, 128)
        self._A_p = _pad2d(A, self._Np, self._Np).astype(jnp.bfloat16)
        self._Theta_p = _pad2d(self.Theta, self._in_p,
                               self._out_p).astype(jnp.bfloat16)
        if featureless:
            # featureless: out = A @ Theta, so Theta rows must span the nodes.
            self._Theta_node_p = _pad2d(self.Theta, self._Np,
                                        self._out_p).astype(jnp.bfloat16)

    def __call__(self, x=None):
        relu_fused = (self.activation == "relu") or (self.activation is jax.nn.relu)
        if self.featureless:
            out_p = _matmul_padded(self._A_p, self._Theta_node_p,
                                   apply_relu=relu_fused,
                                   out_dtype=jnp.float32,
                                   tm_target=self._t_node,
                                   tk_target=self._t_node)
        else:
            x = jnp.asarray(x, jnp.float32)
            # x is small relative to A; the per-call pad/cast is cheap.
            x_p = _pad2d(x, self._Np, self._in_p).astype(jnp.bfloat16)
            out_p = gcn_forward_padded(self._A_p, x_p, self._Theta_p,
                                       t_node=self._t_node,
                                       apply_relu=relu_fused)
        out = out_p[:self.n_nodes, :self.output_dim]
        if (self.activation is not None) and not relu_fused:
            out = self.activation(out)   # non-ReLU activations applied outside the kernel
        self.embedding = out
        return out


if __name__ == "__main__":
    # Small synthetic graph: 256 nodes, 128 input features, 128 output features.
    n_nodes, input_dim, output_dim = 256, 128, 128

    root = jax.random.PRNGKey(0)
    k_a, k_x, k_theta = jax.random.split(root, 3)

    # Synthetic (dense) normalized-adjacency-like matrix and node features.
    A_tilde = jax.random.uniform(k_a, (n_nodes, n_nodes), jnp.float32) / n_nodes
    x = jax.random.normal(k_x, (n_nodes, input_dim), jnp.float32)

    layer = GraphConvolution(
        input_dim, output_dim, A_tilde, activation="relu",
        featureless=False, dropout_rate=0.0, key=k_theta,
    )

    out = jax.block_until_ready(layer(x))

    # Pure-JAX f32 reference.  Kernel uses bf16 operands with f32 accumulation,
    # so compare with a correspondingly looser tolerance.
    ref = jnp.maximum(A_tilde @ (x @ layer.Theta), 0.0)
    assert out.shape == (n_nodes, output_dim)
    assert jnp.allclose(out, ref, atol=3e-2, rtol=3e-2), "mismatch vs reference"

    print("KERNEL_OK")
</pallas_src>

<mosaic_0001>
module attributes {stable_mosaic.version = 11 : i64} {
  func.func @_fused_gcn_kernel(%arg0: i32, %arg1: i32, %arg2: memref<256x256xbf16, #tpu.memory_space<vmem>>, %arg3: memref<256x128xbf16, #tpu.memory_space<vmem>>, %arg4: memref<128x128xbf16, #tpu.memory_space<vmem>>, %arg5: memref<256x128xf32, #tpu.memory_space<vmem>>, %arg6: memref<1x256x128xbf16, #tpu.memory_space<vmem>>) attributes {dimension_semantics = [#tpu.dimension_semantics<arbitrary>, #tpu.dimension_semantics<arbitrary>], iteration_bounds = array<i64: 1, 1>, scalar_prefetch = 0 : i64, scratch_operands = 1 : i64, tpu.core_type = #tpu.core_type<tc>, window_params = [{transform_indices = @transform_0, window_bounds = array<i64: 256, 256>}, {transform_indices = @transform_1, window_bounds = array<i64: 256, 128>}, {pipeline_mode = #tpu.pipeline_mode<synchronous>, transform_indices = @transform_2, window_bounds = array<i64: 128, 128>}, {transform_indices = @transform_3, window_bounds = array<i64: 256, 128>}]} {
    %c0_i32 = arith.constant 0 : i32
    %0 = arith.cmpi eq, %arg0, %c0_i32 : i32
    %1 = arith.extui %0 : i1 to i32
    %c0_i32_0 = arith.constant 0 : i32
    %2 = arith.cmpi ne, %1, %c0_i32_0 : i32
    scf.if %2 {
      %c0_12 = arith.constant 0 : index
      %c0_13 = arith.constant 0 : index
      %17 = vector.load %arg3[%c0_12, %c0_13] : memref<256x128xbf16, #tpu.memory_space<vmem>>, vector<256x128xbf16>
      %c0_14 = arith.constant 0 : index
      %c0_15 = arith.constant 0 : index
      %18 = vector.load %arg4[%c0_14, %c0_15] : memref<128x128xbf16, #tpu.memory_space<vmem>>, vector<128x128xbf16>
      %cst_16 = arith.constant dense<0.000000e+00> : vector<256x128xf32>
      %19 = tpu.matmul %17, %18, %cst_16 {dimension_numbers = #tpu.dot_dimension_numbers<[1], [0], [0], [1], [0, 0, 1, 1], [], []>} : vector<256x128xbf16>, vector<128x128xbf16>, vector<256x128xf32> -> vector<256x128xf32>
      %20 = arith.truncf %19 : vector<256x128xf32> to vector<256x128xbf16>
      %21 = arith.index_cast %arg1 : i32 to index
      %c0_17 = arith.constant 0 : index
      %c0_18 = arith.constant 0 : index
      %22 = vector.load %arg6[%21, %c0_17, %c0_18] : memref<1x256x128xbf16, #tpu.memory_space<vmem>>, vector<1x256x128xbf16>
      %23 = vector.shape_cast %22 : vector<1x256x128xbf16> to vector<256x128xbf16>
      %24 = vector.shape_cast %20 : vector<256x128xbf16> to vector<1x256x128xbf16>
      tpu.vector_store %arg6[%21, %c0_17, %c0_18], %24 {strides = array<i32>} : memref<1x256x128xbf16, #tpu.memory_space<vmem>>, vector<1x256x128xbf16>,
    } else {
    }
    %c0_i32_1 = arith.constant 0 : i32
    %3 = arith.cmpi eq, %arg1, %c0_i32_1 : i32
    %4 = arith.extui %3 : i1 to i32
    %c0_i32_2 = arith.constant 0 : i32
    %5 = arith.cmpi ne, %4, %c0_i32_2 : i32
    scf.if %5 {
      %cst_12 = arith.constant 0.000000e+00 : f32
      %17 = vector.broadcast %cst_12 : f32 to vector<256x128xf32>
      %c0_13 = arith.constant 0 : index
      %c0_14 = arith.constant 0 : index
      %18 = vector.load %arg5[%c0_13, %c0_14] : memref<256x128xf32, #tpu.memory_space<vmem>>, vector<256x128xf32>
      tpu.vector_store %arg5[%c0_13, %c0_14], %17 {strides = array<i32>} : memref<256x128xf32, #tpu.memory_space<vmem>>, vector<256x128xf32>,
    } else {
    }
    %c0 = arith.constant 0 : index
    %c0_3 = arith.constant 0 : index
    %6 = vector.load %arg5[%c0, %c0_3] : memref<256x128xf32, #tpu.memory_space<vmem>>, vector<256x128xf32>
    %c0_4 = arith.constant 0 : index
    %c0_5 = arith.constant 0 : index
    %7 = vector.load %arg2[%c0_4, %c0_5] : memref<256x256xbf16, #tpu.memory_space<vmem>>, vector<256x256xbf16>
    %8 = arith.index_cast %arg1 : i32 to index
    %c0_6 = arith.constant 0 : index
    %c0_7 = arith.constant 0 : index
    %9 = vector.load %arg6[%8, %c0_6, %c0_7] : memref<1x256x128xbf16, #tpu.memory_space<vmem>>, vector<1x256x128xbf16>
    %10 = vector.shape_cast %9 : vector<1x256x128xbf16> to vector<256x128xbf16>
    %cst = arith.constant dense<0.000000e+00> : vector<256x128xf32>
    %11 = tpu.matmul %7, %10, %cst {dimension_numbers = #tpu.dot_dimension_numbers<[1], [0], [0], [1], [0, 0, 1, 1], [], []>} : vector<256x256xbf16>, vector<256x128xbf16>, vector<256x128xf32> -> vector<256x128xf32>
    %12 = arith.addf %6, %11 : vector<256x128xf32>
    %c0_8 = arith.constant 0 : index
    %c0_9 = arith.constant 0 : index
    %13 = vector.load %arg5[%c0_8, %c0_9] : memref<256x128xf32, #tpu.memory_space<vmem>>, vector<256x128xf32>
    tpu.vector_store %arg5[%c0_8, %c0_9], %12 {strides = array<i32>} : memref<256x128xf32, #tpu.memory_space<vmem>>, vector<256x128xf32>,
    %c0_i32_10 = arith.constant 0 : i32
    %14 = arith.cmpi eq, %arg1, %c0_i32_10 : i32
    %15 = arith.extui %14 : i1 to i32
    %c0_i32_11 = arith.constant 0 : i32
    %16 = arith.cmpi ne, %15, %c0_i32_11 : i32
    scf.if %16 {
      %c0_12 = arith.constant 0 : index
      %c0_13 = arith.constant 0 : index
      %17 = vector.load %arg5[%c0_12, %c0_13] : memref<256x128xf32, #tpu.memory_space<vmem>>, vector<256x128xf32>
      %cst_14 = arith.constant 0.000000e+00 : f32
      %18 = vector.broadcast %cst_14 : f32 to vector<256x128xf32>
      %19 = arith.maximumf %17, %18 : vector<256x128xf32>
      %c0_15 = arith.constant 0 : index
      %c0_16 = arith.constant 0 : index
      %20 = vector.load %arg5[%c0_15, %c0_16] : memref<256x128xf32, #tpu.memory_space<vmem>>, vector<256x128xf32>
      tpu.vector_store %arg5[%c0_15, %c0_16], %19 {strides = array<i32>} : memref<256x128xf32, #tpu.memory_space<vmem>>, vector<256x128xf32>,
    } else {
    }
    return
  }
  func.func @transform_0(%arg0: i32, %arg1: i32) -> (i32, i32) {
    %c0_i32 = arith.constant 0 : i32
    return %arg0, %arg1 : i32, i32
  }
  func.func @transform_1(%arg0: i32, %arg1: i32) -> (i32, i32) {
    %c0_i32 = arith.constant 0 : i32
    %0 = arith.cmpi eq, %arg0, %c0_i32 : i32
    %c0_i32_0 = arith.constant 0 : i32
    %1 = arith.select %0, %arg1, %c0_i32_0 : i32
    %c0_i32_1 = arith.constant 0 : i32
    %c0_i32_2 = arith.constant 0 : i32
    return %1, %c0_i32_1 : i32, i32
  }
  func.func @transform_2(%arg0: i32, %arg1: i32) -> (i32, i32) {
    %c0_i32 = arith.constant 0 : i32
    %c0_i32_0 = arith.constant 0 : i32
    %c0_i32_1 = arith.constant 0 : i32
    return %c0_i32, %c0_i32_0 : i32, i32
  }
  func.func @transform_3(%arg0: i32, %arg1: i32) -> (i32, i32) {
    %c0_i32 = arith.constant 0 : i32
    %c0_i32_0 = arith.constant 0 : i32
    return %arg0, %c0_i32 : i32, i32
  }
}

</mosaic_0001>

<bundles_post_ra>
// kernel: tpu_custom_call.1
= control target key start
LH: loop header
LB: loop body
LE: loop exit
PB: predicated region body
PF: predicated region fallthrough
CT: control target
= control target key end

     0   :  { %8 = vsyncpa [#allocation4], 0  ;;  %s1599_s0 = inlined_call_operand.hbm [shape: bf16[256,256], index: 0, kind: input, shape index: {}]   ;;  %s1600_s1 = inlined_call_operand.hbm [shape: bf16[256,128], index: 1, kind: input, shape index: {}]   ;;  %s1601_s2 = inlined_call_operand.hbm [shape: bf16[128,128], index: 2, kind: input, shape index: {}]   ;;  %s1602_s3 = inlined_call_operand.hbm [shape: f32[256,128], index: 3, kind: output, shape index: {}]  }
   0x1   :  { %9 = vsyncpa [#allocation7], 0 }
   0x2   :  { %10 = vsyncpa [#allocation5], 0  ;;  %s1511_s12 = smov [#allocation6]   ;;  %s1417_s16 = scalar_lea.hbm %s1600_s1, 2048 }
   0x3   :  { %s33_s13 = sshll.u32 %s1511_s12, 4  ;;  %p1418_p0 = scmp.ne.s32.totalorder %s1600_s1, %s1417_s16  ;;  %s34_s13 = int_to_ptr.vmem [resolvable:$true] %s33_s13 }
   0x4   :  { %p1421_p1 = scmp.lt.u32.totalorder %s1417_s16, %s1600_s1 }
   0x6   :  { %p1423_p2 = pnand %p1421_p1, %p1418_p0 }
   0x8   :  { %1426 = shalt.err (!%p1423_p2)
}
   0x9   :  { %s1427_s21 = scalar_lea.vmem %s34_s13, 2048  ;;  %p1432_p4 = scmp.lt.s32.totalorder %s34_s13, %s34_s13 }
   0xa   :  { %p1428_p3 = scmp.ne.s32.totalorder %s34_s13, %s1427_s21  ;;  %p1433_p5 = scmp.lt.s32.totalorder %s1427_s21, %s1427_s21 }
   0xc   :  { %p1434_p6 = por %p1433_p5, %p1432_p4 }
   0xe   :  { %p1435_p7 = pnand %p1434_p6, %p1428_p3 }
  0x10   :  { %1438 = shalt.err (!%p1435_p7)
}
  0x11   :  { %s1512_s22 = smov 64   ;;  %s1513_s23 = smov 4  }
  0x12   :  { %39 = dma.hbm_to_vmem [thread:$0]  %s1600_s1, 2048, %s34_s13, [#allocation7], %s1512_s22, %s1512_s22, %s1513_s23  }
  0x13   :  { %s1514_s26 = smov [#allocation3]   ;;  %s1439_s30 = scalar_lea.hbm %s1599_s0, 4096 }
  0x14   :  { %s16_s27 = sshll.u32 %s1514_s26, 4  ;;  %p1440_p8 = scmp.ne.s32.totalorder %s1599_s0, %s1439_s30  ;;  %s17_s27 = int_to_ptr.vmem [resolvable:$true] %s16_s27 }
  0x15   :  { %p1443_p9 = scmp.lt.u32.totalorder %s1439_s30, %s1599_s0 }
  0x17   :  { %p1445_p10 = pnand %p1443_p9, %p1440_p8 }
  0x19   :  { %1448 = shalt.err (!%p1445_p10)
}
  0x1a   :  { %s1449_s8 = scalar_lea.vmem %s17_s27, 4096  ;;  %p1454_p12 = scmp.lt.s32.totalorder %s17_s27, %s17_s27 }
  0x1b   :  { %p1450_p11 = scmp.ne.s32.totalorder %s17_s27, %s1449_s8  ;;  %p1455_p13 = scmp.lt.s32.totalorder %s1449_s8, %s1449_s8 }
  0x1d   :  { %p1456_p0 = por %p1455_p13, %p1454_p12 }
  0x1f   :  { %p1457_p1 = pnand %p1456_p0, %p1450_p11 }
  0x21   :  { %1460 = shalt.err (!%p1457_p1)
}
  0x22   :  { %s1515_s1 = smov 128   ;;  %s1516_s9 = smov 8  }
  0x23   :  { %22 = dma.hbm_to_vmem [thread:$0]  %s1599_s0, 4096, %s17_s27, [#allocation4], %s1515_s1, %s1515_s1, %s1516_s9  }
  0x24   :  { %s1517_s12 = smov [#allocation8]   ;;  %s1461_s16 = scalar_lea.hbm %s1601_s2, 1024 }
  0x25   :  { %s45_s13 = sshll.u32 %s1517_s12, 4  ;;  %p1462_p2 = scmp.ne.s32.totalorder %s1601_s2, %s1461_s16  ;;  %s46_s13 = int_to_ptr.vmem [resolvable:$true] %s45_s13 }
  0x26   :  { %p1465_p3 = scmp.lt.u32.totalorder %s1461_s16, %s1601_s2 }
  0x28   :  { %p1467_p4 = pnand %p1465_p3, %p1462_p2 }
  0x2a   :  { %1470 = shalt.err (!%p1467_p4)
}
  0x2b   :  { %s1471_s21 = scalar_lea.vmem %s46_s13, 1024  ;;  %p1476_p6 = scmp.lt.s32.totalorder %s46_s13, %s46_s13 }
  0x2c   :  { %p1472_p5 = scmp.ne.s32.totalorder %s46_s13, %s1471_s21  ;;  %p1477_p7 = scmp.lt.s32.totalorder %s1471_s21, %s1471_s21 }
  0x2e   :  { %p1478_p8 = por %p1477_p7, %p1476_p6 }
  0x30   :  { %p1479_p9 = pnand %p1478_p8, %p1472_p5 }
  0x32   :  { %1482 = shalt.err (!%p1479_p9)
}
  0x33   :  { %51 = dma.hbm_to_vmem [thread:$0]  %s1601_s2, 1024, %s46_s13, [#allocation7], %s1512_s22, %s1512_s22, %s1513_s23  }
  0x34   :  { %1505 = dma.done.wait [#allocation4], 4096  }
  0x35   :  { %1506 = vsyncadd [#allocation4], 4294963200 }
  0x36   :  { %1507 = dma.done.wait [#allocation7], 3072  }
  0x37   :  { %1508 = vsyncadd [#allocation7], 4294964224  ;;  %v1345_v0 = vld [vmem:[#allocation8] sm:$0xff]   ;;  %v1346_v1 = vld [vmem:[#allocation8 + $0x8] sm:$0xff]   ;;  %s1518_s2 = smov [#allocation9]  }
  0x38   :  { %1272 = vmatprep.subr.bf16.mxu0 %v1345_v0  ;;  %v1347_v2 = vld [vmem:[#allocation8 + $0x10] sm:$0xff]   ;;  %v1348_v3 = vld [vmem:[#allocation8 + $0x18] sm:$0xff]   ;;  %v1353_v4 = vld [vmem:[#allocation6] sm:$0xff]   ;;  %s1065_s22 = sshll.u32 %s1518_s2, 4  ;;  %s1066_s22 = int_to_ptr.vmem [resolvable:$true] %s1065_s22 }
  0x39   :  { %1273 = vmatpush3.bf16.msra.mxu0 %v1345_v0  ;;  %1288 = vmatprep.mubr.bf16.mxu0 %v1353_v4  ;;  %v1349_v5 = vld [vmem:[#allocation8 + $0x20] sm:$0xff]   ;;  %v1350_v6 = vld [vmem:[#allocation8 + $0x28] sm:$0xff]   ;;  %v1351_v7 = vld [vmem:[#allocation8 + $0x30] sm:$0xff]   ;;  %s1483_s23 = scalar_lea.vmem %s1066_s22, 4096  ;;  %p1488_p11 = scmp.lt.s32.totalorder %s1066_s22, %s1066_s22 }
  0x3a   :  { %1274 = vmatprep.subr.bf16.mxu0 %v1346_v1  ;;  %v1352_v8 = vld [vmem:[#allocation8 + $0x38] sm:$0xff]   ;;  %v1354_v9 = vld [vmem:[#allocation6 + $0x8] sm:$0xff]   ;;  %v1355_v10 = vld [vmem:[#allocation6 + $0x10] sm:$0xff]   ;;  %p1484_p10 = scmp.ne.s32.totalorder %s1066_s22, %s1483_s23  ;;  %p1489_p12 = scmp.lt.s32.totalorder %s1483_s23, %s1483_s23 }
  0x3b   :  { %v1356_v11 = vld [vmem:[#allocation6 + $0x18] sm:$0xff]   ;;  %v1357_v12 = vld [vmem:[#allocation6 + $0x20] sm:$0xff]   ;;  %v1358_v13 = vld [vmem:[#allocation6 + $0x28] sm:$0xff]  }
  0x3c   :  { %v1359_v14 = vld [vmem:[#allocation6 + $0x30] sm:$0xff]   ;;  %v1360_v15 = vld [vmem:[#allocation6 + $0x38] sm:$0xff]   ;;  %v1361_v16 = vld [vmem:[#allocation6 + $0x40] sm:$0xff]   ;;  %p1490_p13 = por %p1489_p12, %p1488_p11 }
  0x3d   :  { %1275 = vmatpush3.bf16.msra.mxu0 %v1346_v1  ;;  %v1362_v17 = vld [vmem:[#allocation6 + $0x48] sm:$0xff]   ;;  %v1363_v18 = vld [vmem:[#allocation6 + $0x50] sm:$0xff]   ;;  %v1364_v19 = vld [vmem:[#allocation6 + $0x58] sm:$0xff]  }
  0x3e   :  { %1276 = vmatprep.subr.bf16.mxu0 %v1347_v2  ;;  %v1365_v20 = vld [vmem:[#allocation6 + $0x60] sm:$0xff]   ;;  %v1366_v21 = vld [vmem:[#allocation6 + $0x68] sm:$0xff]   ;;  %v1367_v22 = vld [vmem:[#allocation6 + $0x70] sm:$0xff]   ;;  %p1491_p0 = pnand %p1490_p13, %p1484_p10 }
  0x3f   :  { %v1368_v23 = vld [vmem:[#allocation6 + $0x78] sm:$0xff]   ;;  %v1371_v24 = vld [vmem:[#allocation3 + $0x44] ss:$8 sps:$4 sm:$0xff]  }
  0x40   :  { %800 = vmatprep.mubr.bf16.mxu1 %v1371_v24  ;;  %v1395_v25 = vld [vmem:[#allocation3 + $0x4] ss:$8 sps:$4 sm:$0xff]  }
  0x41   :  { %1277 = vmatpush3.bf16.msra.mxu0 %v1347_v2  ;;  %v1381_v24 = vld [vmem:[#allocation3 + $0x84] ss:$8 sps:$4 sm:$0xff]  }
  0x42   :  { %1278 = vmatprep.subr.bf16.mxu0 %v1348_v3 }
  0x45   :  { %1279 = vmatpush3.bf16.msra.mxu0 %v1348_v3 }
  0x46   :  { %1280 = vmatprep.subr.bf16.mxu0 %v1349_v5 }
  0x49   :  { %1281 = vmatpush3.bf16.msra.mxu0 %v1349_v5 }
  0x4a   :  { %1282 = vmatprep.subr.bf16.mxu0 %v1350_v6 }
  0x4d   :  { %1283 = vmatpush3.bf16.msra.mxu0 %v1350_v6 }
  0x4e   :  { %1284 = vmatprep.subr.bf16.mxu0 %v1351_v7 }
  0x51   :  { %1285 = vmatpush3.bf16.msra.mxu0 %v1351_v7 }
  0x52   :  { %1286 = vmatprep.subr.bf16.mxu0 %v1352_v8 }
  0x55   :  { %1287 = vmatpush3.bf16.msra.mxu0 %v1352_v8 }
  0x58   :  { %1289 = vmatmul.mubr.bf16.vlgmr.msra.gmra.mrb[0].mxu0 %v1354_v9 }
  0x59   :  { %1292 = vmatprep.mubr.bf16.mxu0 %v1355_v10  ;;  %v1369_v10 = vld [vmem:[#allocation3 + $0x40] ss:$8 sps:$4 sm:$0xff]  }
  0x60   :  { %1293 = vmatmul.mubr.bf16.gmra.mrb[4].mxu0 %v1356_v11  ;;  %v1393_v11 = vld [vmem:[#allocation3] ss:$8 sps:$4 sm:$0xff]  }
  0x61   :  { %1296 = vmatprep.mubr.bf16.mxu0 %v1357_v12  ;;  %v1372_v12 = vld [vmem:[#allocation3 + $0x54] ss:$8 sps:$4 sm:$0xff]  }
  0x68   :  { %1297 = vmatmul.mubr.bf16.gmra.mrb[8].mxu0 %v1358_v13  ;;  %v1399_v13 = vld [vmem:[#allocation3 + $0x14] ss:$8 sps:$4 sm:$0xff]  }
  0x69   :  { %1300 = vmatprep.mubr.bf16.mxu0 %v1359_v14  ;;  %v1374_v14 = vld [vmem:[#allocation3 + $0x50] ss:$8 sps:$4 sm:$0xff]  }
  0x70   :  { %1301 = vmatmul.mubr.bf16.gmra.mrb[12].mxu0 %v1360_v15  ;;  %v1401_v15 = vld [vmem:[#allocation3 + $0x10] ss:$8 sps:$4 sm:$0xff]  }
  0x71   :  { %1304 = vmatprep.mubr.bf16.mxu0 %v1361_v16  ;;  %v1375_v16 = vld [vmem:[#allocation3 + $0x64] ss:$8 sps:$4 sm:$0xff]  }
  0x78   :  { %1305 = vmatmul.mubr.bf16.gmra.mrb[16].mxu0 %v1362_v17  ;;  %v1405_v17 = vld [vmem:[#allocation3 + $0x24] ss:$8 sps:$4 sm:$0xff]  }
  0x79   :  { %1308 = vmatprep.mubr.bf16.mxu0 %v1363_v18  ;;  %v1377_v18 = vld [vmem:[#allocation3 + $0x60] ss:$8 sps:$4 sm:$0xff]  }
  0x80   :  { %1309 = vmatmul.mubr.bf16.gmra.mrb[20].mxu0 %v1364_v19  ;;  %v1407_v19 = vld [vmem:[#allocation3 + $0x20] ss:$8 sps:$4 sm:$0xff]  }
  0x81   :  { %1312 = vmatprep.mubr.bf16.mxu0 %v1365_v20  ;;  %v1378_v20 = vld [vmem:[#allocation3 + $0x74] ss:$8 sps:$4 sm:$0xff]  }
  0x88   :  { %1313 = vmatmul.mubr.bf16.gmra.mrb[24].mxu0 %v1366_v21  ;;  %v1411_v21 = vld [vmem:[#allocation3 + $0x34] ss:$8 sps:$4 sm:$0xff]  }
  0x89   :  { %1316 = vmatprep.mubr.bf16.mxu0 %v1367_v22  ;;  %v1380_v22 = vld [vmem:[#allocation3 + $0x70] ss:$8 sps:$4 sm:$0xff]  }
  0x90   :  { %1317 = vmatmul.mubr.bf16.gmra.mrb[28].mxu0 %v1368_v23  ;;  %v1413_v23 = vld [vmem:[#allocation3 + $0x30] ss:$8 sps:$4 sm:$0xff]  }
  0x91   :  { %768 = vmatprep.mubr.bf16.mxu0 %v1395_v25  ;;  %v1383_v25 = vld [vmem:[#allocation3 + $0x80] ss:$8 sps:$4 sm:$0xff]  }
 0x12b   :  { %v1290_v26 = vpop.f32.mrb[0].mxu0 }
 0x12c   :  { %v295_v27 = vpop.f32.mrb[1].mxu0 }
 0x12d   :  { %v1291_v28 = vpop.f32.mrb[2].mxu0 }
 0x12e   :  { %v423_v29 = vpack.c.bf16 %v1291_v28, %v1290_v26  ;;  %v298_v30 = vpop.f32.mrb[3].mxu0  ;;  %v1384_v26 = vld [vmem:[#allocation3 + $0x94] ss:$8 sps:$4 sm:$0xff]   ;;  %v1387_v28 = vld [vmem:[#allocation3 + $0xa4] ss:$8 sps:$4 sm:$0xff]  }
 0x12f   :  { %v422_v31 = vpack.c.bf16 %v298_v30, %v295_v27  ;;  %v1386_v27 = vld [vmem:[#allocation3 + $0x90] ss:$8 sps:$4 sm:$0xff]   ;;  %v1390_v30 = vld [vmem:[#allocation3 + $0xb4] ss:$8 sps:$4 sm:$0xff]  }
 0x133   :  { %v1294_v32 = vpop.f32.mrb[4].mxu0 }
 0x134   :  { %v311_v33 = vpop.f32.mrb[5].mxu0 }
 0x135   :  { %v1295_v34 = vpop.f32.mrb[6].mxu0 }
 0x136   :  { %v425_v35 = vpack.c.bf16 %v1295_v34, %v1294_v32  ;;  %v314_v36 = vpop.f32.mrb[7].mxu0  ;;  %v1396_v32 = vld [vmem:[#allocation3 + $0xc4] ss:$8 sps:$4 sm:$0xff]   ;;  %v1402_v34 = vld [vmem:[#allocation3 + $0xd4] ss:$8 sps:$4 sm:$0xff]  }
 0x137   :  { %v424_v37 = vpack.c.bf16 %v314_v36, %v311_v33  ;;  %v1398_v33 = vld [vmem:[#allocation3 + $0xc0] ss:$8 sps:$4 sm:$0xff]   ;;  %v1408_v36 = vld [vmem:[#allocation3 + $0xe4] ss:$8 sps:$4 sm:$0xff]  }
 0x13b   :  { %v1298_v38 = vpop.f32.mrb[8].mxu0 }
 0x13c   :  { %v327_v39 = vpop.f32.mrb[9].mxu0 }
 0x13d   :  { %v1299_v40 = vpop.f32.mrb[10].mxu0 }
 0x13e   :  { %v427_v41 = vpack.c.bf16 %v1299_v40, %v1298_v38  ;;  %v330_v42 = vpop.f32.mrb[11].mxu0  ;;  %v1414_v38 = vld [vmem:[#allocation3 + $0xf4] ss:$8 sps:$4 sm:$0xff]  }
 0x13f   :  { %v426_v43 = vpack.c.bf16 %v330_v42, %v327_v39  ;;  %v1416_v39 = vld [vmem:[#allocation3 + $0xf0] ss:$8 sps:$4 sm:$0xff]  }
 0x143   :  { %v1302_v44 = vpop.f32.mrb[12].mxu0 }
 0x144   :  { %v343_v45 = vpop.f32.mrb[13].mxu0 }
 0x145   :  { %v1303_v46 = vpop.f32.mrb[14].mxu0 }
 0x146   :  { %v429_v47 = vpack.c.bf16 %v1303_v46, %v1302_v44  ;;  %v346_v48 = vpop.f32.mrb[15].mxu0 }
 0x147   :  { %v428_v49 = vpack.c.bf16 %v346_v48, %v343_v45 }
 0x14b   :  { %v1306_v50 = vpop.f32.mrb[16].mxu0 }
 0x14c   :  { %v359_v51 = vpop.f32.mrb[17].mxu0 }
 0x14d   :  { %v1307_v52 = vpop.f32.mrb[18].mxu0 }
 0x14e   :  { %v431_v53 = vpack.c.bf16 %v1307_v52, %v1306_v50  ;;  %v362_v54 = vpop.f32.mrb[19].mxu0 }
 0x14f   :  { %v430_v55 = vpack.c.bf16 %v362_v54, %v359_v51 }
 0x151   :  { %1160 = vmatprep.subr.bf16.mxu0 %v430_v55  ;;  %1320 = vmatprep.subr.bf16.mxu1 %v430_v55 }
 0x152   :  { %1161 = vmatpush3.bf16.msra.mxu0 %v422_v31  ;;  %1328 = vmatpush3.bf16.msra.mxu1 %v422_v31  ;;  %v1392_v31 = vld [vmem:[#allocation3 + $0xb0] ss:$8 sps:$4 sm:$0xff]  }
 0x153   :  { %v1310_v56 = vpop.f32.mrb[20].mxu0  ;;  %1162 = vmatprep.subr.bf16.mxu0 %v431_v53  ;;  %1321 = vmatprep.subr.bf16.mxu1 %v431_v53 }
 0x154   :  { %v375_v57 = vpop.f32.mrb[21].mxu0 }
 0x155   :  { %v1311_v58 = vpop.f32.mrb[22].mxu0 }
 0x156   :  { %v433_v59 = vpack.c.bf16 %v1311_v58, %v1310_v56  ;;  %v378_v60 = vpop.f32.mrb[23].mxu0  ;;  %1163 = vmatpush3.bf16.msra.mxu0 %v423_v29  ;;  %1329 = vmatpush3.bf16.msra.mxu1 %v423_v29  ;;  %v1389_v29 = vld [vmem:[#allocation3 + $0xa0] ss:$8 sps:$4 sm:$0xff]  }
 0x157   :  { %v432_v61 = vpack.c.bf16 %v378_v60, %v375_v57 }
 0x159   :  { %1164 = vmatprep.subr.bf16.mxu0 %v432_v61  ;;  %1322 = vmatprep.subr.bf16.mxu1 %v432_v61 }
 0x15a   :  { %1165 = vmatpush3.bf16.msra.mxu0 %v424_v37  ;;  %1330 = vmatpush3.bf16.msra.mxu1 %v424_v37  ;;  %v1410_v37 = vld [vmem:[#allocation3 + $0xe0] ss:$8 sps:$4 sm:$0xff]  }
 0x15b   :  { %v1314_v62 = vpop.f32.mrb[24].mxu0  ;;  %1166 = vmatprep.subr.bf16.mxu0 %v433_v59  ;;  %1323 = vmatprep.subr.bf16.mxu1 %v433_v59 }
 0x15c   :  { %v391_v63 = vpop.f32.mrb[25].mxu0 }
 0x15d   :  { %v1315_v0 = vpop.f32.mrb[26].mxu0 }
 0x15e   :  { %v435_v1 = vpack.c.bf16 %v1315_v0, %v1314_v62  ;;  %v394_v2 = vpop.f32.mrb[27].mxu0  ;;  %1167 = vmatpush3.bf16.msra.mxu0 %v425_v35  ;;  %1331 = vmatpush3.bf16.msra.mxu1 %v425_v35  ;;  %v1404_v35 = vld [vmem:[#allocation3 + $0xd0] ss:$8 sps:$4 sm:$0xff]  }
 0x15f   :  { %v434_v3 = vpack.c.bf16 %v394_v2, %v391_v63 }
 0x161   :  { %1168 = vmatprep.subr.bf16.mxu0 %v434_v3  ;;  %1324 = vmatprep.subr.bf16.mxu1 %v434_v3 }
 0x162   :  { %1169 = vmatpush3.bf16.msra.mxu0 %v426_v43  ;;  %1332 = vmatpush3.bf16.msra.mxu1 %v426_v43 }
 0x163   :  { %v1318_v4 = vpop.f32.mrb[28].mxu0  ;;  %1170 = vmatprep.subr.bf16.mxu0 %v435_v1  ;;  %1325 = vmatprep.subr.bf16.mxu1 %v435_v1 }
 0x164   :  { %v407_v5 = vpop.f32.mrb[29].mxu0 }
 0x165   :  { %v1319_v6 = vpop.f32.mrb[30].mxu0 }
 0x166   :  { %v437_v7 = vpack.c.bf16 %v1319_v6, %v1318_v4  ;;  %v410_v8 = vpop.f32.mrb[31].mxu0  ;;  %1171 = vmatpush3.bf16.msra.mxu0 %v427_v41  ;;  %1333 = vmatpush3.bf16.msra.mxu1 %v427_v41 }
 0x167   :  { %v436_v9 = vpack.c.bf16 %v410_v8, %v407_v5 }
 0x169   :  { %1172 = vmatprep.subr.bf16.mxu0 %v436_v9  ;;  %1326 = vmatprep.subr.bf16.mxu1 %v436_v9 }
 0x16a   :  { %1173 = vmatpush3.bf16.msra.mxu0 %v428_v49  ;;  %1334 = vmatpush3.bf16.msra.mxu1 %v428_v49 }
 0x16b   :  { %1174 = vmatprep.subr.bf16.mxu0 %v437_v7  ;;  %1327 = vmatprep.subr.bf16.mxu1 %v437_v7 }
 0x16e   :  { %1175 = vmatpush3.bf16.msra.mxu0 %v429_v47  ;;  %1335 = vmatpush3.bf16.msra.mxu1 %v429_v47 }
 0x171   :  { %801 = vmatmul.mubr.bf16.vlgmr.msra.gmra.mrb[0].mxu1 %v1369_v10  ;;  %769 = vmatmul.mubr.bf16.vlgmr.msra.gmra.mrb[32].mxu0 %v1393_v11 }
 0x172   :  { %808 = vmatprep.mubr.bf16.mxu1 %v1372_v12  ;;  %776 = vmatprep.mubr.bf16.mxu0 %v1399_v13 }
 0x179   :  { %809 = vmatmul.mubr.bf16.gmra.mrb[4].mxu1 %v1374_v14  ;;  %777 = vmatmul.mubr.bf16.gmra.mrb[36].mxu0 %v1401_v15 }
 0x17a   :  { %816 = vmatprep.mubr.bf16.mxu1 %v1375_v16  ;;  %784 = vmatprep.mubr.bf16.mxu0 %v1405_v17 }
 0x181   :  { %817 = vmatmul.mubr.bf16.gmra.mrb[8].mxu1 %v1377_v18  ;;  %785 = vmatmul.mubr.bf16.gmra.mrb[40].mxu0 %v1407_v19 }
 0x182   :  { %824 = vmatprep.mubr.bf16.mxu1 %v1378_v20  ;;  %792 = vmatprep.mubr.bf16.mxu0 %v1411_v21 }
 0x189   :  { %825 = vmatmul.mubr.bf16.gmra.mrb[12].mxu1 %v1380_v22  ;;  %793 = vmatmul.mubr.bf16.gmra.mrb[44].mxu0 %v1413_v23 }
 0x18a   :  { %832 = vmatprep.mubr.bf16.mxu1 %v1381_v24 }
 0x191   :  { %833 = vmatmul.mubr.bf16.gmra.mrb[16].mxu1 %v1383_v25 }
 0x192   :  { %840 = vmatprep.mubr.bf16.mxu1 %v1384_v26 }
 0x199   :  { %841 = vmatmul.mubr.bf16.gmra.mrb[20].mxu1 %v1386_v27 }
 0x19a   :  { %848 = vmatprep.mubr.bf16.mxu1 %v1387_v28 }
 0x1a1   :  { %849 = vmatmul.mubr.bf16.gmra.mrb[24].mxu1 %v1389_v29 }
 0x1a2   :  { %856 = vmatprep.mubr.bf16.mxu1 %v1390_v30 }
 0x1a9   :  { %857 = vmatmul.mubr.bf16.gmra.mrb[28].mxu1 %v1392_v31 }
 0x1aa   :  { %864 = vmatprep.mubr.bf16.mxu1 %v1396_v32 }
 0x1b1   :  { %865 = vmatmul.mubr.bf16.gmra.mrb[32].mxu1 %v1398_v33 }
 0x1b2   :  { %872 = vmatprep.mubr.bf16.mxu1 %v1402_v34 }
 0x1b9   :  { %873 = vmatmul.mubr.bf16.gmra.mrb[36].mxu1 %v1404_v35 }
 0x1ba   :  { %880 = vmatprep.mubr.bf16.mxu1 %v1408_v36 }
 0x1c1   :  { %881 = vmatmul.mubr.bf16.gmra.mrb[40].mxu1 %v1410_v37 }
 0x1c2   :  { %888 = vmatprep.mubr.bf16.mxu1 %v1414_v38 }
 0x1c9   :  { %889 = vmatmul.mubr.bf16.gmra.mrb[44].mxu1 %v1416_v39 }
 0x244   :  { %v1200_v40 = vpop.f32.mrb[0].mxu1  ;;  %v1176_v41 = vpop.f32.mrb[32].mxu0 }
 0x245   :  { %v1201_v42 = vpop.f32.mrb[1].mxu1  ;;  %v1177_v43 = vpop.f32.mrb[33].mxu0 }
 0x246   :  { %v1202_v44 = vadd.f32 %v1201_v42, %v1200_v40  ;;  %v1203_v45 = vpop.f32.mrb[2].mxu1  ;;  %v1178_v46 = vadd.f32 %v1177_v43, %v1176_v41  ;;  %v1179_v47 = vpop.f32.mrb[34].mxu0 }
 0x247   :  { %v1204_v48 = vpop.f32.mrb[3].mxu1  ;;  %v1180_v49 = vpop.f32.mrb[35].mxu0 }
 0x248   :  { %v1205_v50 = vadd.f32 %v1204_v48, %v1203_v45  ;;  %v1181_v51 = vadd.f32 %v1180_v49, %v1179_v47  ;;  %v1004_v52 = vmax.f32 %v1202_v44, 0.0  ;;  %v996_v53 = vmax.f32 %v1178_v46, 0.0 }
 0x24a   :  { %1036 = vst [vmem:[#allocation9 + $0x40] sm:$0xff] %v1004_v52  ;;  %v1005_v54 = vmax.f32 %v1205_v50, 0.0  ;;  %1028 = vst [vmem:[#allocation9] sm:$0xff] %v996_v53  ;;  %v997_v56 = vmax.f32 %v1181_v51, 0.0 }
 0x24c   :  { %v1206_v55 = vpop.f32.mrb[4].mxu1  ;;  %v1182_v57 = vpop.f32.mrb[36].mxu0  ;;  %1037 = vst [vmem:[#allocation9 + $0x48] sm:$0xff] %v1005_v54  ;;  %1029 = vst [vmem:[#allocation9 + $0x8] sm:$0xff] %v997_v56 }
 0x24d   :  { %v1207_v58 = vpop.f32.mrb[5].mxu1  ;;  %v1183_v59 = vpop.f32.mrb[37].mxu0 }
 0x24e   :  { %v1208_v60 = vadd.f32 %v1207_v58, %v1206_v55  ;;  %v1209_v61 = vpop.f32.mrb[6].mxu1  ;;  %v1184_v62 = vadd.f32 %v1183_v59, %v1182_v57  ;;  %v1185_v63 = vpop.f32.mrb[38].mxu0 }
 0x24f   :  { %v1210_v0 = vpop.f32.mrb[7].mxu1  ;;  %v1186_v1 = vpop.f32.mrb[39].mxu0 }
 0x250   :  { %v1211_v2 = vadd.f32 %v1210_v0, %v1209_v61  ;;  %v1187_v3 = vadd.f32 %v1186_v1, %v1185_v63  ;;  %v1006_v4 = vmax.f32 %v1208_v60, 0.0  ;;  %v998_v5 = vmax.f32 %v1184_v62, 0.0 }
 0x252   :  { %1038 = vst [vmem:[#allocation9 + $0x50] sm:$0xff] %v1006_v4  ;;  %v1007_v6 = vmax.f32 %v1211_v2, 0.0  ;;  %1030 = vst [vmem:[#allocation9 + $0x10] sm:$0xff] %v998_v5  ;;  %v999_v8 = vmax.f32 %v1187_v3, 0.0 }
 0x254   :  { %v1212_v7 = vpop.f32.mrb[8].mxu1  ;;  %v1188_v9 = vpop.f32.mrb[40].mxu0  ;;  %1039 = vst [vmem:[#allocation9 + $0x58] sm:$0xff] %v1007_v6  ;;  %1031 = vst [vmem:[#allocation9 + $0x18] sm:$0xff] %v999_v8 }
 0x255   :  { %v1213_v10 = vpop.f32.mrb[9].mxu1  ;;  %v1189_v11 = vpop.f32.mrb[41].mxu0 }
 0x256   :  { %v1214_v12 = vadd.f32 %v1213_v10, %v1212_v7  ;;  %v1215_v13 = vpop.f32.mrb[10].mxu1  ;;  %v1190_v14 = vadd.f32 %v1189_v11, %v1188_v9  ;;  %v1191_v15 = vpop.f32.mrb[42].mxu0 }
 0x257   :  { %v1216_v16 = vpop.f32.mrb[11].mxu1  ;;  %v1192_v17 = vpop.f32.mrb[43].mxu0 }
 0x258   :  { %v1217_v18 = vadd.f32 %v1216_v16, %v1215_v13  ;;  %v1193_v19 = vadd.f32 %v1192_v17, %v1191_v15  ;;  %v1008_v20 = vmax.f32 %v1214_v12, 0.0  ;;  %v1000_v21 = vmax.f32 %v1190_v14, 0.0 }
 0x25a   :  { %1040 = vst [vmem:[#allocation9 + $0x60] sm:$0xff] %v1008_v20  ;;  %v1009_v22 = vmax.f32 %v1217_v18, 0.0  ;;  %1032 = vst [vmem:[#allocation9 + $0x20] sm:$0xff] %v1000_v21  ;;  %v1001_v24 = vmax.f32 %v1193_v19, 0.0 }
 0x25c   :  { %v1218_v23 = vpop.f32.mrb[12].mxu1  ;;  %v1194_v25 = vpop.f32.mrb[44].mxu0  ;;  %1041 = vst [vmem:[#allocation9 + $0x68] sm:$0xff] %v1009_v22  ;;  %1033 = vst [vmem:[#allocation9 + $0x28] sm:$0xff] %v1001_v24 }
 0x25d   :  { %v1219_v26 = vpop.f32.mrb[13].mxu1  ;;  %v1195_v27 = vpop.f32.mrb[45].mxu0 }
 0x25e   :  { %v1220_v28 = vadd.f32 %v1219_v26, %v1218_v23  ;;  %v1221_v29 = vpop.f32.mrb[14].mxu1  ;;  %v1196_v30 = vadd.f32 %v1195_v27, %v1194_v25  ;;  %v1197_v31 = vpop.f32.mrb[46].mxu0 }
 0x25f   :  { %v1222_v32 = vpop.f32.mrb[15].mxu1  ;;  %v1198_v33 = vpop.f32.mrb[47].mxu0 }
 0x260   :  { %v1223_v34 = vadd.f32 %v1222_v32, %v1221_v29  ;;  %v1199_v35 = vadd.f32 %v1198_v33, %v1197_v31  ;;  %v1010_v36 = vmax.f32 %v1220_v28, 0.0  ;;  %v1002_v37 = vmax.f32 %v1196_v30, 0.0 }
 0x262   :  { %1042 = vst [vmem:[#allocation9 + $0x70] sm:$0xff] %v1010_v36  ;;  %v1011_v38 = vmax.f32 %v1223_v34, 0.0  ;;  %1034 = vst [vmem:[#allocation9 + $0x30] sm:$0xff] %v1002_v37  ;;  %v1003_v40 = vmax.f32 %v1199_v35, 0.0 }
 0x264   :  { %v1224_v39 = vpop.f32.mrb[16].mxu1  ;;  %1043 = vst [vmem:[#allocation9 + $0x78] sm:$0xff] %v1011_v38  ;;  %1035 = vst [vmem:[#allocation9 + $0x38] sm:$0xff] %v1003_v40 }
 0x265   :  { %v1225_v41 = vpop.f32.mrb[17].mxu1 }
 0x266   :  { %v1226_v42 = vadd.f32 %v1225_v41, %v1224_v39  ;;  %v1227_v43 = vpop.f32.mrb[18].mxu1 }
 0x267   :  { %v1228_v44 = vpop.f32.mrb[19].mxu1 }
 0x268   :  { %v1229_v45 = vadd.f32 %v1228_v44, %v1227_v43  ;;  %v1012_v46 = vmax.f32 %v1226_v42, 0.0 }
 0x26a   :  { %1044 = vst [vmem:[#allocation9 + $0x80] sm:$0xff] %v1012_v46  ;;  %v1013_v47 = vmax.f32 %v1229_v45, 0.0 }
 0x26c   :  { %v1230_v48 = vpop.f32.mrb[20].mxu1  ;;  %1045 = vst [vmem:[#allocation9 + $0x88] sm:$0xff] %v1013_v47 }
 0x26d   :  { %v1231_v49 = vpop.f32.mrb[21].mxu1 }
 0x26e   :  { %v1232_v50 = vadd.f32 %v1231_v49, %v1230_v48  ;;  %v1233_v51 = vpop.f32.mrb[22].mxu1 }
 0x26f   :  { %v1234_v52 = vpop.f32.mrb[23].mxu1 }
 0x270   :  { %v1235_v53 = vadd.f32 %v1234_v52, %v1233_v51  ;;  %v1014_v54 = vmax.f32 %v1232_v50, 0.0 }
 0x272   :  { %1046 = vst [vmem:[#allocation9 + $0x90] sm:$0xff] %v1014_v54  ;;  %v1015_v55 = vmax.f32 %v1235_v53, 0.0 }
 0x274   :  { %v1236_v56 = vpop.f32.mrb[24].mxu1  ;;  %1047 = vst [vmem:[#allocation9 + $0x98] sm:$0xff] %v1015_v55 }
 0x275   :  { %v1237_v57 = vpop.f32.mrb[25].mxu1 }
 0x276   :  { %v1238_v58 = vadd.f32 %v1237_v57, %v1236_v56  ;;  %v1239_v59 = vpop.f32.mrb[26].mxu1 }
 0x277   :  { %v1240_v60 = vpop.f32.mrb[27].mxu1 }
 0x278   :  { %v1241_v61 = vadd.f32 %v1240_v60, %v1239_v59  ;;  %v1016_v62 = vmax.f32 %v1238_v58, 0.0 }
 0x27a   :  { %1048 = vst [vmem:[#allocation9 + $0xa0] sm:$0xff] %v1016_v62  ;;  %v1017_v63 = vmax.f32 %v1241_v61, 0.0 }
 0x27c   :  { %v1242_v0 = vpop.f32.mrb[28].mxu1  ;;  %1049 = vst [vmem:[#allocation9 + $0xa8] sm:$0xff] %v1017_v63 }
 0x27d   :  { %v1243_v1 = vpop.f32.mrb[29].mxu1 }
 0x27e   :  { %v1244_v2 = vadd.f32 %v1243_v1, %v1242_v0  ;;  %v1245_v3 = vpop.f32.mrb[30].mxu1 }
 0x27f   :  { %v1246_v4 = vpop.f32.mrb[31].mxu1 }
 0x280   :  { %v1247_v5 = vadd.f32 %v1246_v4, %v1245_v3  ;;  %v1018_v6 = vmax.f32 %v1244_v2, 0.0 }
 0x282   :  { %1050 = vst [vmem:[#allocation9 + $0xb0] sm:$0xff] %v1018_v6  ;;  %v1019_v7 = vmax.f32 %v1247_v5, 0.0 }
 0x284   :  { %v1248_v8 = vpop.f32.mrb[32].mxu1  ;;  %1051 = vst [vmem:[#allocation9 + $0xb8] sm:$0xff] %v1019_v7 }
 0x285   :  { %v1249_v9 = vpop.f32.mrb[33].mxu1 }
 0x286   :  { %v1250_v10 = vadd.f32 %v1249_v9, %v1248_v8  ;;  %v1251_v11 = vpop.f32.mrb[34].mxu1 }
 0x287   :  { %v1252_v12 = vpop.f32.mrb[35].mxu1 }
 0x288   :  { %v1253_v13 = vadd.f32 %v1252_v12, %v1251_v11  ;;  %v1020_v14 = vmax.f32 %v1250_v10, 0.0 }
 0x28a   :  { %1052 = vst [vmem:[#allocation9 + $0xc0] sm:$0xff] %v1020_v14  ;;  %v1021_v15 = vmax.f32 %v1253_v13, 0.0 }
 0x28c   :  { %v1254_v16 = vpop.f32.mrb[36].mxu1  ;;  %1053 = vst [vmem:[#allocation9 + $0xc8] sm:$0xff] %v1021_v15 }
 0x28d   :  { %v1255_v17 = vpop.f32.mrb[37].mxu1 }
 0x28e   :  { %v1256_v18 = vadd.f32 %v1255_v17, %v1254_v16  ;;  %v1257_v19 = vpop.f32.mrb[38].mxu1 }
 0x28f   :  { %v1258_v20 = vpop.f32.mrb[39].mxu1 }
 0x290   :  { %v1259_v21 = vadd.f32 %v1258_v20, %v1257_v19  ;;  %v1022_v22 = vmax.f32 %v1256_v18, 0.0 }
 0x292   :  { %1054 = vst [vmem:[#allocation9 + $0xd0] sm:$0xff] %v1022_v22  ;;  %v1023_v23 = vmax.f32 %v1259_v21, 0.0 }
 0x294   :  { %v1260_v24 = vpop.f32.mrb[40].mxu1  ;;  %1055 = vst [vmem:[#allocation9 + $0xd8] sm:$0xff] %v1023_v23 }
 0x295   :  { %v1261_v25 = vpop.f32.mrb[41].mxu1 }
 0x296   :  { %v1262_v26 = vadd.f32 %v1261_v25, %v1260_v24  ;;  %v1263_v27 = vpop.f32.mrb[42].mxu1 }
 0x297   :  { %v1264_v28 = vpop.f32.mrb[43].mxu1 }
 0x298   :  { %v1265_v29 = vadd.f32 %v1264_v28, %v1263_v27  ;;  %v1024_v30 = vmax.f32 %v1262_v26, 0.0 }
 0x29a   :  { %1056 = vst [vmem:[#allocation9 + $0xe0] sm:$0xff] %v1024_v30  ;;  %v1025_v31 = vmax.f32 %v1265_v29, 0.0 }
 0x29c   :  { %v1266_v32 = vpop.f32.mrb[44].mxu1  ;;  %1057 = vst [vmem:[#allocation9 + $0xe8] sm:$0xff] %v1025_v31 }
 0x29d   :  { %v1267_v33 = vpop.f32.mrb[45].mxu1 }
 0x29e   :  { %v1268_v34 = vadd.f32 %v1267_v33, %v1266_v32  ;;  %v1269_v35 = vpop.f32.mrb[46].mxu1 }
 0x29f   :  { %v1270_v36 = vpop.f32.mrb[47].mxu1 }
 0x2a0   :  { %v1271_v37 = vadd.f32 %v1270_v36, %v1269_v35  ;;  %v1026_v38 = vmax.f32 %v1268_v34, 0.0 }
 0x2a2   :  { %1058 = vst [vmem:[#allocation9 + $0xf0] sm:$0xff] %v1026_v38  ;;  %v1027_v39 = vmax.f32 %v1271_v37, 0.0 }
 0x2a4   :  { %1059 = vst [vmem:[#allocation9 + $0xf8] sm:$0xff] %v1027_v39 }
 0x2a5   :  { %1494 = shalt.err (!%p1491_p0)
}
 0x2a6   :  { %s1495_s27 = scalar_lea.hbm %s1602_s3, 4096 }
 0x2a7   :  { %p1496_p1 = scmp.ne.s32.totalorder %s1602_s3, %s1495_s27  ;;  %p1499_p2 = scmp.lt.u32.totalorder %s1495_s27, %s1602_s3 }
 0x2a9   :  { %p1501_p3 = pnand %p1499_p2, %p1496_p1 }
 0x2ab   :  { %1504 = shalt.err (!%p1501_p3)
}
 0x2ac   :  { %1071 = dma.vmem_to_hbm [thread:$0]  %s1066_s22, 4096, %s1602_s3, [#allocation5], %s1515_s1, %s1515_s1, %s1516_s9  }
 0x2ad   :  { %1509 = dma.done.wait [#allocation5], 4096  }
 0x2ae   :  { %1510 = vsyncadd [#allocation5], 4294963200 }
 0x2af   :  { %1075 = vsyncpa [#allocation4], 1 }
 0x2b0   :  { %1076 = vsyncpa [#allocation7], 1 }
 0x2b1   :  { %1077 = vsyncpa [#allocation5], 1 }

</bundles_post_ra>
